<compile_context>
chip_gen: v7x
topology: tpu7x:2x2x1
jax: 0.10.0
libtpu: 0.0.40
codegen_flags: <defaults>
</compile_context>

<pallas_src>
import jax
import jax.numpy as jnp
from jax.experimental import pallas as pl
from jax.experimental.pallas import tpu as pltpu


def _hbm_copy_kernel(src_ref, dst_ref, sem):
    # Single HBM->HBM DMA of the whole table; the TensorCore stays idle.
    cp = pltpu.make_async_copy(src_ref, dst_ref, sem)
    cp.start()
    cp.wait()


def _materialize_copy(x):
    """Fresh HBM copy of `x` via one DMA (no VMEM round trip)."""
    nbytes = x.size * x.dtype.itemsize
    return pl.pallas_call(
        _hbm_copy_kernel,
        out_shape=jax.ShapeDtypeStruct(x.shape, x.dtype),
        in_specs=[pl.BlockSpec(memory_space=pl.ANY)],
        out_specs=pl.BlockSpec(memory_space=pl.ANY),
        scratch_shapes=[pltpu.SemaphoreType.DMA],
        cost_estimate=pl.CostEstimate(
            flops=0, transcendentals=0, bytes_accessed=2 * nbytes
        ),
    )(x)


def node_embeddings_forward(weight, *, materialize=False):
    """Pallas/JAX implementation of NodeEmbeddings.forward().

    The PyTorch module returns `self.embedding.weight` (an alias of the
    parameter), so the default path returns `weight` as-is at zero cost.
    Pass materialize=True only if an independent copy of the table is
    required; that path is a single HBM->HBM DMA kernel.
    """
    if not materialize:
        return weight
    return _materialize_copy(weight)


if __name__ == "__main__":
    # Module config (small shapes consistent with the module).
    num_nodes = 32
    embedding_dim = 128

    # Deterministic parameter init matching nn.Embedding defaults: N(0, 1).
    key = jax.random.PRNGKey(0)
    embedding_weight = jax.random.normal(
        key, (num_nodes, embedding_dim), dtype=jnp.float32
    )

    # Default (zero-cost) forward: returns the embedding weight matrix itself.
    out = node_embeddings_forward(embedding_weight)
    out = jax.block_until_ready(out)
    assert out.shape == (num_nodes, embedding_dim)
    assert out.dtype == jnp.float32
    assert jnp.array_equal(out, embedding_weight)

    # Materialized forward: exercises the Pallas HBM->HBM DMA kernel once.
    out_copy = node_embeddings_forward(embedding_weight, materialize=True)
    out_copy = jax.block_until_ready(out_copy)
    assert out_copy.shape == (num_nodes, embedding_dim)
    assert out_copy.dtype == jnp.float32
    assert jnp.array_equal(out_copy, embedding_weight)

    print("KERNEL_OK")
</pallas_src>

<mosaic_0001>
module attributes {stable_mosaic.version = 11 : i64} {
  func.func @_hbm_copy_kernel(%arg0: memref<32x128xf32, #tpu.memory_space<any>>, %arg1: memref<32x128xf32, #tpu.memory_space<any>>, %arg2: memref<!tpu.dma_semaphore, #tpu.memory_space<semaphore_mem>>) attributes {dimension_semantics = [], scalar_prefetch = 0 : i64, scratch_operands = 1 : i64, tpu.core_type = #tpu.core_type<tc>} {
    tpu.enqueue_dma source(%arg0 : memref<32x128xf32, #tpu.memory_space<any>>) target(%arg1 : memref<32x128xf32, #tpu.memory_space<any>>) target_semaphore(%arg2 : memref<!tpu.dma_semaphore, #tpu.memory_space<semaphore_mem>>)
    tpu.wait_dma2 semaphore(%arg2 : memref<!tpu.dma_semaphore, #tpu.memory_space<semaphore_mem>>) src(%arg0 : memref<32x128xf32, #tpu.memory_space<any>>) dst(%arg1 : memref<32x128xf32, #tpu.memory_space<any>>)
    return
  }
}

</mosaic_0001>

<bundles_post_ra>
// kernel: tpu_custom_call.1
= control target key start
LH: loop header
LB: loop body
LE: loop exit
PB: predicated region body
PF: predicated region fallthrough
CT: control target
= control target key end

     0   :  { %s34_s6 = smov [#allocation2]   ;;  %s35_s7 = smov [#allocation3]   ;;  %s53_s0 = inlined_call_operand.hbm [shape: f32[32,128], index: 0, kind: input, shape index: {}]   ;;  %s54_s1 = inlined_call_operand.hbm [shape: f32[32,128], index: 1, kind: output, shape index: {}]  }
   0x1   :  { %s36_s8 = smov 0  }
   0x2   :  { %18 = dma.general %s53_s0, 512, %s54_s1, %s34_s6, %s35_s7, [#allocation4], %s36_s8, 0  }
   0x3   :  { %32 = dma.done.wait [#allocation2], 512 }
   0x4   :  { %33 = vsyncadd [#allocation2], 4294966784 }
   0x5   :  { %22 = vsyncmov [#allocation2] }
   0x8   :  { %s23_s13 = vpop.sfrf %22 }
   0x9   :  { %p28_p0 = scmp.ne.s32.totalorder %s23_s13, 0 }
   0xb   :  { %27 = shalt.err (%p28_p0)  }

</bundles_post_ra>
